<compile_context>
chip_gen: v6e
topology: v6e:2x2x1
jax: 0.10.0
libtpu: 0.0.40
codegen_flags: <defaults>
</compile_context>

<pallas_src>
import jax
import jax.numpy as jnp
from jax.experimental import pallas as pl
from jax.experimental.pallas import tpu as pltpu


# ----------------------------- Pallas kernels -----------------------------

def _make_tail_kernel(k_f, alpha_f, c_f, c_s, add_audio):
    """One (n, hw-tile) block of:
         fs   = relu(conv_f2s(x_f) * bn_scale + bn_shift)   (per-tap MXU accumulation)
         cache_fs_new = fs (bf16)                            (only the NEW channels)
         fuse[:, :c_s] = x_s (+ afs[:c_s]) ; fuse[:, c_s:] = fs (+ afs[c_s:])
    """

    def kernel(*refs):
        if add_audio:
            xs_ref, xf_ref, w_ref, shift_ref, afs_ref, fuse_ref, fs_ref, acc_ref = refs
        else:
            xs_ref, xf_ref, w_ref, shift_ref, fuse_ref, fs_ref, acc_ref = refs
            afs_ref = None

        t_s, hw, _ = xs_ref.shape
        m = t_s * hw

        # conv_f2s as k_f tap-accumulated matmuls; x_f is pre-grouped so every tap is
        # a plain static slice (q, r) = divmod(tap, alpha_f) -- no strided reads.
        for tap in range(k_f):
            q, r = divmod(tap, alpha_f)
            slab = xf_ref[q:q + t_s, r, :, :].reshape(m, c_f)          # (M, C_f) bf16
            w_tap = w_ref[tap * c_f:(tap + 1) * c_f, :]                # (C_f, C_f2s) bf16
            contrib = jnp.dot(slab, w_tap, preferred_element_type=jnp.float32)
            if tap == 0:
                acc_ref[...] = contrib
            else:
                acc_ref[...] += contrib

        fs = jnp.maximum(acc_ref[...] + shift_ref[...], 0.0)          # BN scale folded in w
        c_f2s = fs.shape[-1]
        fs3 = fs.reshape(t_s, hw, c_f2s)

        fs_ref[...] = fs3.astype(fs_ref.dtype)                         # bf16 cache half only

        xs = xs_ref[...].astype(jnp.float32)
        if add_audio:
            afs = afs_ref[...]                                         # (t_s, 1, C_fuse) f32
            fuse_ref[:, :, 0:c_s] = xs + afs[:, :, 0:c_s]
            fuse_ref[:, :, c_s:c_s + c_f2s] = fs3 + afs[:, :, c_s:c_s + c_f2s]
        else:
            fuse_ref[:, :, 0:c_s] = xs
            fuse_ref[:, :, c_s:c_s + c_f2s] = fs3

    return kernel


def _pick_hw_tile(hw, t_s, row_target=2048):
    """Largest hw tile (multiple of 8, divides hw) with t_s*tile <= ~row_target rows."""
    per_t = max(row_target // max(t_s, 1), 8)
    if hw <= per_t or hw % 8 != 0:
        return hw
    start = min(per_t, hw)
    start -= start % 8
    for cand in range(start, 7, -8):
        if hw % cand == 0:
            return cand
    return hw


def fused_f2s_tail(xs_cl, xf_grp, w_scaled, shift, afs4, *, add_audio, k_f, alpha_f,
                   row_target=2048, vmem_limit_bytes=32 * 1024 * 1024):
    """xs_cl: (N, T_s, HW, C_s) bf16; xf_grp: (N, T_grp, alpha_f, HW, C_f) bf16
       (time zero-padded + grouped by stride); w_scaled: (k_f*C_f, C_f2s) bf16 with
       BN scale folded; shift: (C_f2s,) f32; afs4: (N, T_s, 1, C_fuse) f32.
       Returns (fuse (N,T_s,HW,C_fuse) f32, fs_half (N,T_s,HW,C_f2s) bf16)."""
    N, T_s, HW, C_s = xs_cl.shape
    _, T_grp, A, _, C_f = xf_grp.shape
    K_f, C_f2s = w_scaled.shape
    C_fuse = C_s + C_f2s
    assert A == alpha_f and K_f == k_f * C_f
    assert T_grp >= T_s + (k_f - 1) // alpha_f

    hw_tile = _pick_hw_tile(HW, T_s, row_target)
    grid = (N, HW // hw_tile)

    kernel = _make_tail_kernel(k_f, alpha_f, C_f, C_s, add_audio)
    in_specs = [
        pl.BlockSpec((None, T_s, hw_tile, C_s), lambda n, j: (n, 0, j, 0)),
        pl.BlockSpec((None, T_grp, A, hw_tile, C_f), lambda n, j: (n, 0, 0, j, 0)),
        pl.BlockSpec((K_f, C_f2s), lambda n, j: (0, 0)),
        pl.BlockSpec((1, C_f2s), lambda n, j: (0, 0)),
    ]
    args = [xs_cl, xf_grp, w_scaled, shift.reshape(1, -1)]
    if add_audio:
        in_specs.append(pl.BlockSpec((None, T_s, 1, C_fuse), lambda n, j: (n, 0, 0, 0)))
        args.append(afs4)

    out_shape = (jax.ShapeDtypeStruct((N, T_s, HW, C_fuse), jnp.float32),
                 jax.ShapeDtypeStruct((N, T_s, HW, C_f2s), jnp.bfloat16))
    out_specs = (pl.BlockSpec((None, T_s, hw_tile, C_fuse), lambda n, j: (n, 0, j, 0)),
                 pl.BlockSpec((None, T_s, hw_tile, C_f2s), lambda n, j: (n, 0, j, 0)))

    return pl.pallas_call(
        kernel,
        out_shape=out_shape,
        grid=grid,
        in_specs=in_specs,
        out_specs=out_specs,
        scratch_shapes=[pltpu.VMEM((T_s * hw_tile, C_f2s), jnp.float32)],
        compiler_params=pltpu.CompilerParams(
            dimension_semantics=("parallel", "parallel"),
            vmem_limit_bytes=vmem_limit_bytes),
    )(*args)


def _make_audio_kernel(stages, compute_dtype):
    """Fused conv_a2fs_0..K-1 (+BN+ReLU each) for one sample; intermediates live in a
    VMEM scratch.  BN scale is folded into the weights; only pad rows are zeroed."""
    n_stage = len(stages)

    def kernel(*refs):
        a_ref = refs[0]
        w_refs = refs[1:1 + 2 * n_stage]
        out_ref = refs[1 + 2 * n_stage]
        buf_ref = refs[2 + 2 * n_stage]

        for s_i, st in enumerate(stages):
            w_ref = w_refs[2 * s_i + 0]
            sh_ref = w_refs[2 * s_i + 1]
            k, stride = st["k"], st["stride"]
            t_out, c_in, c_out = st["t_out"], st["c_in"], st["c_out"]
            src = a_ref if s_i == 0 else buf_ref

            acc = jnp.zeros((t_out, c_out), jnp.float32)
            for tap in range(k):
                row_idx = pl.ds(tap, t_out) if stride == 1 else pl.ds(tap, t_out, stride)
                slab = src[row_idx, 0:c_in]
                w_tap = w_ref[tap * c_in:(tap + 1) * c_in, :]
                acc = acc + jnp.dot(slab.astype(compute_dtype), w_tap,
                                    preferred_element_type=jnp.float32)
            y = jnp.maximum(acc + sh_ref[...], 0.0)          # BN scale folded into w

            if s_i + 1 < n_stage:
                nxt = stages[s_i + 1]
                # read width of the next stage must equal what we write (review).
                assert nxt["c_in"] == c_out
                pad_n, read_end = nxt["pad"], (nxt["t_out"] - 1) * nxt["stride"] + nxt["k"]
                n_cols = buf_ref.shape[1]
                if pad_n > 0:
                    buf_ref[pl.ds(0, pad_n), :] = jnp.zeros((pad_n, n_cols), buf_ref.dtype)
                tail = read_end - (pad_n + t_out)
                if tail > 0:
                    buf_ref[pl.ds(pad_n + t_out, tail), :] = jnp.zeros((tail, n_cols),
                                                                       buf_ref.dtype)
                buf_ref[pl.ds(pad_n, t_out), 0:c_out] = y
            else:
                out_ref[...] = y.astype(out_ref.dtype)

    return kernel


def fused_audio_stack(a_pad, stages, params, *, compute_dtype=jnp.bfloat16,
                      vmem_limit_bytes=32 * 1024 * 1024):
    """a_pad: (N, T_a + 2*pad0, C_a) bf16 (already zero padded for stage 0).
       Returns afs: (N, T_s, C_fuse) f32."""
    N, T_pad0, C_a = a_pad.shape
    last = stages[-1]
    T_s, C_fuse = last["t_out"], last["c_out"]

    inter = [(stages[s]["t_in"] + 2 * stages[s]["pad"], stages[s]["c_in"])
             for s in range(1, len(stages))]
    T_buf = max((t for t, _ in inter), default=8)
    C_buf = max((c for _, c in inter), default=128)

    in_specs = [pl.BlockSpec((None, T_pad0, C_a), lambda i: (i, 0, 0))]
    args = [a_pad]
    for st, w, sh in zip(stages, params["a_w"], params["a_shift"]):
        in_specs.append(pl.BlockSpec(w.shape, lambda i: (0, 0)))
        in_specs.append(pl.BlockSpec((1, st["c_out"]), lambda i: (0, 0)))
        args += [w, sh.reshape(1, -1)]

    kernel = _make_audio_kernel(stages, compute_dtype)
    return pl.pallas_call(
        kernel,
        out_shape=jax.ShapeDtypeStruct((N, T_s, C_fuse), jnp.float32),
        grid=(N,),
        in_specs=in_specs,
        out_specs=pl.BlockSpec((None, T_s, C_fuse), lambda i: (i, 0, 0)),
        scratch_shapes=[pltpu.VMEM((T_buf, C_buf), jnp.float32)],
        compiler_params=pltpu.CompilerParams(
            dimension_semantics=("parallel",),
            vmem_limit_bytes=vmem_limit_bytes),
    )(*args)


# --------------------------- pure-JAX references ---------------------------

def _fuse_tail_ref(xs_cl, xf_grp, w_flat, shift, afs4, add_audio, k_f, alpha_f, c_f, cdt):
    N, T_s, HW, C_s = xs_cl.shape
    C_f2s = w_flat.shape[-1]
    acc = jnp.zeros((N, T_s, HW, C_f2s), jnp.float32)
    for tap in range(k_f):
        q, r = divmod(tap, alpha_f)
        slab = xf_grp[:, q:q + T_s, r, :, :]
        acc = acc + jnp.einsum("nthc,co->ntho", slab,
                               w_flat[tap * c_f:(tap + 1) * c_f, :],
                               preferred_element_type=jnp.float32)
    fs = jnp.maximum(acc + shift.reshape(1, 1, 1, -1), 0.0)
    fuse = jnp.concatenate([xs_cl.astype(jnp.float32), fs], axis=-1)
    if add_audio:
        fuse = fuse + afs4
    return fuse, fs.astype(cdt)


def _conv1d_stage_ref(a, w_flat, shift, k, stride, pad, cdt):
    """a: (N, T, C_in) channels-last; w_flat rows ordered (tap, c_in), scale folded."""
    N, T, C_in = a.shape
    ap = jnp.pad(a, ((0, 0), (pad, pad), (0, 0)))
    t_out = (T + 2 * pad - k) // stride + 1
    c_out = w_flat.shape[-1]
    acc = jnp.zeros((N, t_out, c_out), jnp.float32)
    for tap in range(k):
        sl = ap[:, tap: tap + (t_out - 1) * stride + 1: stride, :]
        acc = acc + jnp.einsum("ntc,co->nto", sl.astype(cdt),
                               w_flat[tap * C_in:(tap + 1) * C_in, :],
                               preferred_element_type=jnp.float32)
    return jnp.maximum(acc + shift.reshape(1, 1, -1), 0.0)


def _audio_stack_ref(a_nc, stages, params, cdt):
    cur = a_nc
    for i, st in enumerate(stages):
        cur = _conv1d_stage_ref(cur, params["a_w"][i], params["a_shift"][i],
                                st["k"], st["stride"], st["pad"], cdt)
    return cur


# ------------------------------- JAX glue ---------------------------------

def _bn_fold(c, eps):
    """Deterministic inference-mode BN params folded to scale/shift."""
    i = jnp.arange(c, dtype=jnp.float32)
    gamma = 1.0 + 0.05 * i / max(c, 1)
    beta = 0.02 * i / max(c, 1) - 0.01
    rmean = 0.01 * jnp.sin(i)
    rvar = 1.0 + 0.1 * jnp.cos(i) ** 2
    scale = gamma / jnp.sqrt(rvar + eps)
    shift = beta - rmean * scale
    return scale, shift


def audio_stage_config(cfg):
    C_fuse = cfg["C_s"] + cfg["C_f"] * cfg["ratio_f"]
    stages = []
    c_in, t_in = cfg["C_a"], cfg["T_a"]
    for idx in range(cfg["conv_num_a"]):
        if idx == cfg["conv_num_a"] - 1:
            c_out, stride = C_fuse, cfg["alpha_a"]
        else:
            c_out, stride = cfg["interm_a"], 1
        k = cfg["k_a"]
        pad = k // 2
        t_out = (t_in + 2 * pad - k) // stride + 1
        stages.append(dict(k=k, stride=stride, pad=pad,
                           c_in=c_in, c_out=c_out, t_in=t_in, t_out=t_out))
        c_in, t_in = c_out, t_out
    return stages


def make_params(key, cfg, compute_dtype=jnp.bfloat16):
    """Kernel-ready params: weights flattened (tap, c_in)->rows, BN scale folded in,
    cast to compute_dtype; BN shift kept in f32."""
    stages = audio_stage_config(cfg)
    C_f2s = cfg["C_f"] * cfg["ratio_f"]
    keys = jax.random.split(key, 1 + len(stages))
    p = {}

    # conv_f2s: torch weight (C_out, C_in, k_f, 1, 1) -> (k_f*C_in, C_out), rows (tap, c_in).
    w = 0.1 * jax.random.normal(keys[0], (C_f2s, cfg["C_f"], cfg["k_f"]), jnp.float32)
    w_flat = jnp.transpose(w, (2, 1, 0)).reshape(cfg["k_f"] * cfg["C_f"], C_f2s)
    scale, shift = _bn_fold(C_f2s, cfg["eps"])
    p["w_f2s"] = (w_flat * scale[None, :]).astype(compute_dtype)
    p["f2s_shift"] = shift

    # conv_a2fs_{idx}: torch weight (C_out, C_in, 1, k_a, 1) -> (k_a*C_in, C_out).
    p["a_w"], p["a_shift"] = [], []
    for idx, st in enumerate(stages):
        w = 0.1 * jax.random.normal(keys[1 + idx], (st["c_out"], st["c_in"], st["k"]),
                                    jnp.float32)
        w_flat = jnp.transpose(w, (2, 1, 0)).reshape(st["k"] * st["c_in"], st["c_out"])
        s, b = _bn_fold(st["c_out"], cfg["eps"])
        p["a_w"].append((w_flat * s[None, :]).astype(compute_dtype))
        p["a_shift"].append(b)
    return p, stages


def fuse_av_forward(x_s, x_f, x_a, params, cfg, stages, mode="AFS",
                    get_misaligned_audio=False, use_pallas=True,
                    compute_dtype=jnp.bfloat16, materialize_cache=True,
                    audio_pallas_min_batch=8):
    """Mirrors FuseAV.forward([x_s, x_f, x_a]) with use_fs_fusion=use_afs_fusion=True."""
    # TODO(synk): get_misaligned_audio=True path (pos/neg chunking), training-mode BN,
    #             and the AVS loss sub-module (built in __init__ but unused in forward).
    assert not get_misaligned_audio
    cache = {}
    if mode == "NONE":
        return [x_s, x_f, x_a], cache

    cdt = compute_dtype
    add_audio = "A" in mode
    N, C_s, T_s, H, W = x_s.shape
    _, C_f, T_f, _, _ = x_f.shape
    HW = H * W
    k_f, alpha_f = cfg["k_f"], cfg["alpha_f"]
    C_f2s = params["w_f2s"].shape[-1]
    C_fuse = C_s + C_f2s

    # Channels-last bf16 views (cast BEFORE the transpose halves transpose bytes).
    # Note: x_s is consumed in bf16 inside the kernel (review); the first half of
    # `fuse` therefore carries bf16-rounded x_s.
    xs_cl = jnp.transpose(x_s.astype(cdt), (0, 2, 3, 4, 1)).reshape(N, T_s, HW, C_s)
    xf_cl = jnp.transpose(x_f.astype(cdt), (0, 2, 3, 4, 1)).reshape(N, T_f, HW, C_f)

    # Temporal zero-pad + group by the conv stride: no materialized im2col, every tap
    # in the kernel becomes a plain static slice (q, r) = divmod(tap, alpha_f).
    front = k_f // 2
    L_needed = max(front + T_f, (T_s - 1) * alpha_f + k_f)
    L = -(-L_needed // alpha_f) * alpha_f
    xf_pad = jnp.pad(xf_cl, ((0, 0), (front, L - front - T_f), (0, 0), (0, 0)))
    xf_grp = xf_pad.reshape(N, L // alpha_f, alpha_f, HW, C_f)

    # ---- Audio path: frequency mean (linear, tiny) + fused conv stack ----
    Na, C_a, D_a, T_a, F_a = x_a.shape
    assert D_a == 1
    a_nc = jnp.transpose(jnp.mean(x_a, axis=-1).reshape(Na, C_a, T_a), (0, 2, 1))
    if use_pallas and N >= audio_pallas_min_batch:
        pad0 = stages[0]["pad"]
        a_pad = jnp.pad(a_nc, ((0, 0), (pad0, pad0), (0, 0))).astype(cdt)
        afs = fused_audio_stack(a_pad, stages, params, compute_dtype=cdt)
    else:
        # Review: for tiny batches the Pallas audio stack is pure launch/step
        # overhead; a plain XLA implementation is at least as fast.
        afs = _audio_stack_ref(a_nc, stages, params, cdt)
    assert afs.shape == (N, T_s, C_fuse)
    afs4 = afs.reshape(N, T_s, 1, C_fuse)

    # ---- Fused tail: conv_f2s (tap-accumulated) + BN + ReLU + channel-split writes
    #      of fuse and the new cache half + audio broadcast add ----
    if use_pallas:
        fuse_cl, fs_half = fused_f2s_tail(xs_cl, xf_grp, params["w_f2s"],
                                          params["f2s_shift"], afs4,
                                          add_audio=add_audio, k_f=k_f, alpha_f=alpha_f)
    else:
        fuse_cl, fs_half = _fuse_tail_ref(xs_cl, xf_grp, params["w_f2s"],
                                          params["f2s_shift"], afs4, add_audio,
                                          k_f, alpha_f, C_f, cdt)

    fuse = jnp.transpose(fuse_cl.reshape(N, T_s, H, W, C_fuse), (0, 4, 1, 2, 3))

    # cache['fs'] pieces stay channels-last and un-duplicated by default (review);
    # the torch NCTHW concat layout is only materialized on request.
    cache["fs_new_cl"] = fs_half.reshape(N, T_s, H, W, C_f2s)
    if materialize_cache:
        fs_n = jnp.transpose(cache["fs_new_cl"].astype(jnp.float32), (0, 4, 1, 2, 3))
        cache["fs"] = jnp.concatenate([x_s, fs_n], axis=1)

    return [fuse, x_f, x_a], cache


# --------------------------------- main ------------------------------------

if __name__ == "__main__":
    cfg = dict(
        N=2,
        C_s=128,           # dim_in_s
        C_f=64,            # dim_in_f
        ratio_f=2,         # fusion_conv_channel_ratio_f -> C_f2s = 128, C_fuse = 256
        k_f=5, alpha_f=4,
        T_s=4, H=16, W=16,  # x_f has T_f = alpha_f * T_s = 16
        C_a=32, T_a=16, F_a=8,
        k_a=3, alpha_a=4, conv_num_a=2,
        interm_a=64,       # fusion_conv_channel_dim_a ('ByDim')
        eps=1e-5,
    )
    N, T_f = cfg["N"], cfg["alpha_f"] * cfg["T_s"]

    key = jax.random.PRNGKey(0)
    k1, k2, k3, kp = jax.random.split(key, 4)
    x_s = jax.random.normal(k1, (N, cfg["C_s"], cfg["T_s"], cfg["H"], cfg["W"]), jnp.float32)
    x_f = jax.random.normal(k2, (N, cfg["C_f"], T_f, cfg["H"], cfg["W"]), jnp.float32)
    x_a = jax.random.normal(k3, (N, cfg["C_a"], 1, cfg["T_a"], cfg["F_a"]), jnp.float32)

    params, stages = make_params(kp, cfg)

    # audio_pallas_min_batch=1 forces the Pallas audio kernel here so it is exercised;
    # the default (8) routes tiny batches to XLA per the performance review.
    outs, cache = fuse_av_forward(x_s, x_f, x_a, params, cfg, stages, mode="AFS",
                                  use_pallas=True, materialize_cache=True,
                                  audio_pallas_min_batch=1)
    fuse = outs[0]
    jax.block_until_ready(fuse)

    # Pure-JAX reference with identical operand precision (bf16 inputs/weights, f32
    # accumulation) to validate the Pallas kernels.
    outs_ref, cache_ref = fuse_av_forward(x_s, x_f, x_a, params, cfg, stages, mode="AFS",
                                          use_pallas=False, materialize_cache=True)
    fuse_ref = outs_ref[0]

    C_fuse = cfg["C_s"] + cfg["C_f"] * cfg["ratio_f"]
    assert fuse.shape == (N, C_fuse, cfg["T_s"], cfg["H"], cfg["W"]), fuse.shape
    assert cache["fs"].shape == (N, C_fuse, cfg["T_s"], cfg["H"], cfg["W"])
    # fuse is fp32 (only accumulation-order differences); the cache fs-half is bf16.
    assert jnp.allclose(fuse, fuse_ref, atol=5e-3, rtol=5e-3), "fuse mismatch vs jnp reference"
    assert jnp.allclose(cache["fs"].astype(jnp.float32),
                        cache_ref["fs"].astype(jnp.float32),
                        atol=1e-2, rtol=1e-2), "cache['fs'] mismatch"

    print("KERNEL_OK")
</pallas_src>

<mosaic_0001>
module attributes {stable_mosaic.version = 11 : i64} {
  func.func @kernel(%arg0: i32, %arg1: memref<1x18x32xbf16, #tpu.memory_space<vmem>>, %arg2: memref<96x64xbf16, #tpu.memory_space<vmem>>, %arg3: memref<1x64xf32, #tpu.memory_space<vmem>>, %arg4: memref<192x256xbf16, #tpu.memory_space<vmem>>, %arg5: memref<1x256xf32, #tpu.memory_space<vmem>>, %arg6: memref<1x4x256xf32, #tpu.memory_space<vmem>>, %arg7: memref<18x64xf32, #tpu.memory_space<vmem>>) attributes {dimension_semantics = [#tpu.dimension_semantics<parallel>], iteration_bounds = array<i64: 2>, scalar_prefetch = 0 : i64, scratch_operands = 1 : i64, tpu.core_type = #tpu.core_type<tc>, window_params = [{transform_indices = @transform_0, window_bounds = array<i64: 1, 18, 32>}, {pipeline_mode = #tpu.pipeline_mode<synchronous>, transform_indices = @transform_1, window_bounds = array<i64: 96, 64>}, {pipeline_mode = #tpu.pipeline_mode<synchronous>, transform_indices = @transform_2, window_bounds = array<i64: 1, 64>}, {pipeline_mode = #tpu.pipeline_mode<synchronous>, transform_indices = @transform_3, window_bounds = array<i64: 192, 256>}, {pipeline_mode = #tpu.pipeline_mode<synchronous>, transform_indices = @transform_4, window_bounds = array<i64: 1, 256>}, {transform_indices = @transform_5, window_bounds = array<i64: 1, 4, 256>}]} {
    %cst = arith.constant 0.000000e+00 : f32
    %0 = vector.broadcast %cst : f32 to vector<16x64xf32>
    %c0 = arith.constant 0 : index
    %c0_0 = arith.constant 0 : index
    %c0_1 = arith.constant 0 : index
    %1 = vector.load %arg1[%c0, %c0_0, %c0_1] : memref<1x18x32xbf16, #tpu.memory_space<vmem>>, vector<1x16x32xbf16>
    %2 = vector.shape_cast %1 : vector<1x16x32xbf16> to vector<16x32xbf16>
    %c0_2 = arith.constant 0 : index
    %c0_3 = arith.constant 0 : index
    %3 = vector.load %arg2[%c0_2, %c0_3] : memref<96x64xbf16, #tpu.memory_space<vmem>>, vector<32x64xbf16>
    %cst_4 = arith.constant dense<0.000000e+00> : vector<16x64xf32>
    %4 = tpu.matmul %2, %3, %cst_4 {dimension_numbers = #tpu.dot_dimension_numbers<[1], [0], [0], [1], [0, 0, 1, 1], [], []>} : vector<16x32xbf16>, vector<32x64xbf16>, vector<16x64xf32> -> vector<16x64xf32>
    %5 = arith.addf %0, %4 : vector<16x64xf32>
    %c0_5 = arith.constant 0 : index
    %c1 = arith.constant 1 : index
    %c0_6 = arith.constant 0 : index
    %6 = vector.load %arg1[%c0_5, %c1, %c0_6] : memref<1x18x32xbf16, #tpu.memory_space<vmem>>, vector<1x16x32xbf16>
    %7 = vector.shape_cast %6 : vector<1x16x32xbf16> to vector<16x32xbf16>
    %c32 = arith.constant 32 : index
    %c0_7 = arith.constant 0 : index
    %8 = vector.load %arg2[%c32, %c0_7] : memref<96x64xbf16, #tpu.memory_space<vmem>>, vector<32x64xbf16>
    %cst_8 = arith.constant dense<0.000000e+00> : vector<16x64xf32>
    %9 = tpu.matmul %7, %8, %cst_8 {dimension_numbers = #tpu.dot_dimension_numbers<[1], [0], [0], [1], [0, 0, 1, 1], [], []>} : vector<16x32xbf16>, vector<32x64xbf16>, vector<16x64xf32> -> vector<16x64xf32>
    %10 = arith.addf %5, %9 : vector<16x64xf32>
    %c0_9 = arith.constant 0 : index
    %c2 = arith.constant 2 : index
    %c0_10 = arith.constant 0 : index
    %11 = vector.load %arg1[%c0_9, %c2, %c0_10] : memref<1x18x32xbf16, #tpu.memory_space<vmem>>, vector<1x16x32xbf16>
    %12 = vector.shape_cast %11 : vector<1x16x32xbf16> to vector<16x32xbf16>
    %c64 = arith.constant 64 : index
    %c0_11 = arith.constant 0 : index
    %13 = vector.load %arg2[%c64, %c0_11] : memref<96x64xbf16, #tpu.memory_space<vmem>>, vector<32x64xbf16>
    %cst_12 = arith.constant dense<0.000000e+00> : vector<16x64xf32>
    %14 = tpu.matmul %12, %13, %cst_12 {dimension_numbers = #tpu.dot_dimension_numbers<[1], [0], [0], [1], [0, 0, 1, 1], [], []>} : vector<16x32xbf16>, vector<32x64xbf16>, vector<16x64xf32> -> vector<16x64xf32>
    %15 = arith.addf %10, %14 : vector<16x64xf32>
    %c0_13 = arith.constant 0 : index
    %c0_14 = arith.constant 0 : index
    %16 = vector.load %arg3[%c0_13, %c0_14] : memref<1x64xf32, #tpu.memory_space<vmem>>, vector<1x64xf32>
    %17 = vector.broadcast %16 : vector<1x64xf32> to vector<16x64xf32>
    %18 = arith.addf %15, %17 : vector<16x64xf32>
    %cst_15 = arith.constant 0.000000e+00 : f32
    %19 = vector.broadcast %cst_15 : f32 to vector<16x64xf32>
    %20 = arith.maximumf %18, %19 : vector<16x64xf32>
    %cst_16 = arith.constant 0.000000e+00 : f32
    %21 = vector.broadcast %cst_16 : f32 to vector<1x64xf32>
    %c0_17 = arith.constant 0 : index
    %c0_18 = arith.constant 0 : index
    %22 = vector.load %arg7[%c0_17, %c0_18] : memref<18x64xf32, #tpu.memory_space<vmem>>, vector<1x64xf32>
    tpu.vector_store %arg7[%c0_17, %c0_18], %21 {strides = array<i32>} : memref<18x64xf32, #tpu.memory_space<vmem>>, vector<1x64xf32>,
    %c1_19 = arith.constant 1 : index
    %c0_20 = arith.constant 0 : index
    %23 = vector.load %arg7[%c1_19, %c0_20] : memref<18x64xf32, #tpu.memory_space<vmem>>, vector<16x64xf32>
    tpu.vector_store %arg7[%c1_19, %c0_20], %20 {strides = array<i32>} : memref<18x64xf32, #tpu.memory_space<vmem>>, vector<16x64xf32>,
    %cst_21 = arith.constant 0.000000e+00 : f32
    %24 = vector.broadcast %cst_21 : f32 to vector<4x256xf32>
    %c0_22 = arith.constant 0 : index
    %c0_23 = arith.constant 0 : index
    %25 = tpu.strided_load %arg7[%c0_22, %c0_23] {strides = array<i32: 4, 1>} : memref<18x64xf32, #tpu.memory_space<vmem>>, vector<4x64xf32>
    %c0_24 = arith.constant 0 : index
    %c0_25 = arith.constant 0 : index
    %26 = vector.load %arg4[%c0_24, %c0_25] : memref<192x256xbf16, #tpu.memory_space<vmem>>, vector<64x256xbf16>
    %27 = arith.truncf %25 : vector<4x64xf32> to vector<4x64xbf16>
    %cst_26 = arith.constant dense<0.000000e+00> : vector<4x256xf32>
    %28 = tpu.matmul %27, %26, %cst_26 {dimension_numbers = #tpu.dot_dimension_numbers<[1], [0], [0], [1], [0, 0, 1, 1], [], []>} : vector<4x64xbf16>, vector<64x256xbf16>, vector<4x256xf32> -> vector<4x256xf32>
    %29 = arith.addf %24, %28 : vector<4x256xf32>
    %c1_27 = arith.constant 1 : index
    %c0_28 = arith.constant 0 : index
    %30 = tpu.strided_load %arg7[%c1_27, %c0_28] {strides = array<i32: 4, 1>} : memref<18x64xf32, #tpu.memory_space<vmem>>, vector<4x64xf32>
    %c64_29 = arith.constant 64 : index
    %c0_30 = arith.constant 0 : index
    %31 = vector.load %arg4[%c64_29, %c0_30] : memref<192x256xbf16, #tpu.memory_space<vmem>>, vector<64x256xbf16>
    %32 = arith.truncf %30 : vector<4x64xf32> to vector<4x64xbf16>
    %cst_31 = arith.constant dense<0.000000e+00> : vector<4x256xf32>
    %33 = tpu.matmul %32, %31, %cst_31 {dimension_numbers = #tpu.dot_dimension_numbers<[1], [0], [0], [1], [0, 0, 1, 1], [], []>} : vector<4x64xbf16>, vector<64x256xbf16>, vector<4x256xf32> -> vector<4x256xf32>
    %34 = arith.addf %29, %33 : vector<4x256xf32>
    %c2_32 = arith.constant 2 : index
    %c0_33 = arith.constant 0 : index
    %35 = tpu.strided_load %arg7[%c2_32, %c0_33] {strides = array<i32: 4, 1>} : memref<18x64xf32, #tpu.memory_space<vmem>>, vector<4x64xf32>
    %c128 = arith.constant 128 : index
    %c0_34 = arith.constant 0 : index
    %36 = vector.load %arg4[%c128, %c0_34] : memref<192x256xbf16, #tpu.memory_space<vmem>>, vector<64x256xbf16>
    %37 = arith.truncf %35 : vector<4x64xf32> to vector<4x64xbf16>
    %cst_35 = arith.constant dense<0.000000e+00> : vector<4x256xf32>
    %38 = tpu.matmul %37, %36, %cst_35 {dimension_numbers = #tpu.dot_dimension_numbers<[1], [0], [0], [1], [0, 0, 1, 1], [], []>} : vector<4x64xbf16>, vector<64x256xbf16>, vector<4x256xf32> -> vector<4x256xf32>
    %39 = arith.addf %34, %38 : vector<4x256xf32>
    %c0_36 = arith.constant 0 : index
    %c0_37 = arith.constant 0 : index
    %40 = vector.load %arg5[%c0_36, %c0_37] : memref<1x256xf32, #tpu.memory_space<vmem>>, vector<1x256xf32>
    %41 = vector.broadcast %40 : vector<1x256xf32> to vector<4x256xf32>
    %42 = arith.addf %39, %41 : vector<4x256xf32>
    %cst_38 = arith.constant 0.000000e+00 : f32
    %43 = vector.broadcast %cst_38 : f32 to vector<4x256xf32>
    %44 = arith.maximumf %42, %43 : vector<4x256xf32>
    %c0_39 = arith.constant 0 : index
    %c0_40 = arith.constant 0 : index
    %c0_41 = arith.constant 0 : index
    %45 = vector.load %arg6[%c0_39, %c0_40, %c0_41] : memref<1x4x256xf32, #tpu.memory_space<vmem>>, vector<1x4x256xf32>
    %46 = vector.shape_cast %45 : vector<1x4x256xf32> to vector<4x256xf32>
    %47 = vector.shape_cast %44 : vector<4x256xf32> to vector<1x4x256xf32>
    tpu.vector_store %arg6[%c0_39, %c0_40, %c0_41], %47 {strides = array<i32>} : memref<1x4x256xf32, #tpu.memory_space<vmem>>, vector<1x4x256xf32>,
    return
  }
  func.func @transform_0(%arg0: i32) -> (i32, i32, i32) {
    %c0_i32 = arith.constant 0 : i32
    %c0_i32_0 = arith.constant 0 : i32
    %c0_i32_1 = arith.constant 0 : i32
    return %arg0, %c0_i32, %c0_i32_0 : i32, i32, i32
  }
  func.func @transform_1(%arg0: i32) -> (i32, i32) {
    %c0_i32 = arith.constant 0 : i32
    %c0_i32_0 = arith.constant 0 : i32
    %c0_i32_1 = arith.constant 0 : i32
    return %c0_i32, %c0_i32_0 : i32, i32
  }
  func.func @transform_2(%arg0: i32) -> (i32, i32) {
    %c0_i32 = arith.constant 0 : i32
    %c0_i32_0 = arith.constant 0 : i32
    %c0_i32_1 = arith.constant 0 : i32
    return %c0_i32, %c0_i32_0 : i32, i32
  }
  func.func @transform_3(%arg0: i32) -> (i32, i32) {
    %c0_i32 = arith.constant 0 : i32
    %c0_i32_0 = arith.constant 0 : i32
    %c0_i32_1 = arith.constant 0 : i32
    return %c0_i32, %c0_i32_0 : i32, i32
  }
  func.func @transform_4(%arg0: i32) -> (i32, i32) {
    %c0_i32 = arith.constant 0 : i32
    %c0_i32_0 = arith.constant 0 : i32
    %c0_i32_1 = arith.constant 0 : i32
    return %c0_i32, %c0_i32_0 : i32, i32
  }
  func.func @transform_5(%arg0: i32) -> (i32, i32, i32) {
    %c0_i32 = arith.constant 0 : i32
    %c0_i32_0 = arith.constant 0 : i32
    %c0_i32_1 = arith.constant 0 : i32
    return %arg0, %c0_i32, %c0_i32_0 : i32, i32, i32
  }
}

</mosaic_0001>

<bundles_post_ra>
// kernel: tpu_custom_call.1
= control target key start
LH: loop header
LB: loop body
LE: loop exit
PB: predicated region body
PF: predicated region fallthrough
CT: control target
= control target key end

     0   :  { %10 = vsyncpa [#allocation4], 0  ;;  %s1329_s0 = inlined_call_operand.vmem [shape: bf16[2,18,32], index: 0, kind: input, shape index: {}]   ;;  %s1330_s1 = inlined_call_operand.vmem [shape: bf16[96,64], index: 1, kind: input, shape index: {}]   ;;  %s1331_s2 = inlined_call_operand.vmem [shape: f32[1,64], index: 2, kind: input, shape index: {}]   ;;  %s1332_s3 = inlined_call_operand.hbm [shape: bf16[192,256], index: 3, kind: input, shape index: {}]   ;;  %s1333_s4 = inlined_call_operand.vmem [shape: f32[1,256], index: 4, kind: input, shape index: {}]   ;;  %s1334_s5 = inlined_call_operand.hbm [shape: f32[2,4,256], index: 5, kind: output, shape index: {}]  }
   0x1   :  { %11 = vsyncpa [#allocation5], 0 }
   0x2   :  { %13 = vsyncpa [#allocation5 + $0x1], 0  ;;  %s1179_s18 = smov 0   ;;  %s1181_s19 = smov 0  }
   0x3   :  { %s1183_s20 = smov 0   ;;  %s1185_s21 = smov 0  }
   0x4 LB: > { %s1200_s22 = sadd.s32 4294967295, %s1140_s21   ;;  %s862_s23 = sadd.s32 4294967294, %s1140_s21   ;;  %s1140_s21 = sphi %s1185_s21, %s1342_s21   ;;  %s1136_s20 = sphi %s1183_s20, %s1341_s20   ;;  %s1132_s19 = sphi %s1181_s19, %s1340_s19   ;;  %s1128_s18 = sphi %s1179_s18, %s1339_s18  }
   0x5   : > { %s1204_s24 = sadd.s32 1, %s1140_s21   ;;  %s136_s25 = sadd.s32 1, %s1136_s20 }
   0x6   : > { %s133_s26 = ssub.s32 %s1140_s21, %s1204_s24  ;;  %p146_p0 = scmp.ne.s32.totalorder %s1136_s20, %s1132_s19 }
   0x7   : > { %p134_p1 = scmp.eq.s32.totalorder %s133_s26, 0  ;;  %p147_p2 = scmp.eq.s32.totalorder %s1200_s22, 1 }
   0x8   : > { %p152_p3 = scmp.ne.s32.totalorder %s1132_s19, %s1128_s18  ;;  %p153_p4 = scmp.eq.s32.totalorder %s862_s23, 1 }
   0x9   : > { %s1215_s27 = scalar_select %p134_p1, %s1136_s20, %s136_s25  }
   0xa   : > { %p1217_p5 = por %p147_p2, %p146_p0  ;;  %p1221_p6 = por %p153_p4, %p152_p3 }
   0xb   : > { %p863_p7 = scmp.ge.s32.totalorder %s1140_s21, 1  ;;  %p160_p8 = scmp.lt.s32.totalorder %s1140_s21, 3 }
   0xc   : > { %s1336_s29 = scalar_select %p1221_p6, 1, 0 }
   0xd   : > { %p964_p9 = scmp.eq.s32.totalorder %s1200_s22, 0  ;;  %p1228_p10 = pnand %p863_p7, %p160_p8 }
   0xe   : > { %s1142_s6 = smov [#allocation3]  }
   0xf   : > { %s178_s7 = sshll.u32 %s1142_s6, 4  ;;  %p956_p11 = pneg %p1228_p10  ;;  %s179_s7 = int_to_ptr.vmem [resolvable:$true] %s178_s7 }
  0x10   : > { %s1061_s8 = scalar_lea.vmem %s179_s7, 3072  ;;  %p1069_p3 = scmp.lt.s32.totalorder %s179_s7, %s179_s7 }
  0x11   : > { %p957_p12 = pnand %p964_p9, %p956_p11  ;;  %p1062_p0 = scmp.ne.s32.totalorder %s179_s7, %s1061_s8 }
  0x12   : > { %p1070_p4 = scmp.lt.s32.totalorder %s1061_s8, %s1061_s8 }
  0x13   : > { %p1052_p13 = pneg %p957_p12 }
  0x14   : > { %p1071_p6 = por %p1070_p4, %p1069_p3 }
  0x15   : > { %p1064_p1 = pnand %p1062_p0, %p1052_p13 }
  0x17   : > { %p1065_p2 = pneg %p1064_p1 }
  0x19   : > { %p1072_p7 = pnand %p1071_p6, %p1065_p2 }
  0x1b   : > { %1075 = shalt.err (!%p1072_p7)
}
  0x1c   : > { %s1143_s9 = smov 128   ;;  %s1144_s10 = smov 8  }
  0x1d   : > { %959 = dma.hbm_to_vmem [thread:$0]  (!%p957_p12), %s1332_s3, 3072, %s179_s7, [#allocation4], %s1143_s9, %s1143_s9, %s1144_s10  }
  0x1e   : > { %205 = sbr.rel (%p1228_p10) target bundleno = 506 (0x1fa), region = 40 }
  0x23   : > { %1119 = dma.done.wait (%p964_p9), [#allocation4], 3072  }
  0x24   : > { %1121 = vsyncadd (%p964_p9), [#allocation4], 4294964224  ;;  %p233_p8 = scmp.lt.s32.totalorder %s1200_s22, 1  ;;  %v1145_v0 = vmov 0.0   ;;  %vm1146_vm0 = vmmov 0   ;;  %v1005_v1 = vld [vmem:[%s1330_s1 + $0x18] sm:$0xff]  }
  0x25   : > { %925 = vmatprep.subr.bf16.mxu0 %v1145_v0  ;;  %933 = vmatprep.subr.bf16.mxu1 %v1145_v0  ;;  %v1006_v2 = vld [vmem:[%s1330_s1 + $0x8] sm:$0xff]   ;;  %v1007_v3 = vld [vmem:[%s1330_s1 + $0x10] sm:$0xff]   ;;  %v1008_v4 = vld [vmem:[%s1330_s1] sm:$0xff]   ;;  %vm283_vm1 = vcmask 261120   ;;  %vm258_vm2 = vsmask.f32 7424 }
  0x26   : > { %929 = vmatprep.mubr.msk.bf16.mxu0 %vm1146_vm0, %v1145_v0  ;;  %937 = vmatprep.mubr.msk.bf16.mxu1 %vm1146_vm0, %v1145_v0  ;;  %s234_s13 = scalar_select %p233_p8, %s1200_s22, 1  ;;  %v1011_v15 = vld [vmem:[%s1330_s1 + $0x28] sm:$0xff]   ;;  %v1012_v19 = vld [vmem:[%s1330_s1 + $0x20] sm:$0xff]   ;;  %vm391_vm3 = vcmask 1046528   ;;  %vm464_vm4 = vcmask 516096   ;;  %v1147_v37 = vmov 0  }
  0x27   : > { %926 = vmatpush3.bf16.msra.mxu0 %v1005_v1  ;;  %934 = vmatpush3.bf16.msra.mxu1 %v1006_v2  ;;  %v1016_v23 = vld [vmem:[#allocation3 + $0x74] ss:$8 sps:$4 sm:$0xff]   ;;  %v1014_v24 = vld [vmem:[#allocation3 + $0x70] ss:$8 sps:$4 sm:$0xff]   ;;  %v1022_v27 = vld [vmem:[#allocation3 + $0x64] ss:$8 sps:$4 sm:$0xff]  }
  0x28   : > { %s949_s14 = smul.u32 12, %s234_s13  ;;  %927 = vmatprep.subr.bf16.mxu0 %v1145_v0  ;;  %935 = vmatprep.subr.bf16.mxu1 %v1145_v0  ;;  %v1019_v25 = vld [vmem:[#allocation3 + $0x34] ss:$8 sps:$4 sm:$0xff]   ;;  %v1017_v26 = vld [vmem:[#allocation3 + $0x30] ss:$8 sps:$4 sm:$0xff]   ;;  %vm466_vm5 = vcmask 523264  }
  0x29   : > { %v1020_v28 = vld [vmem:[#allocation3 + $0x60] ss:$8 sps:$4 sm:$0xff]   ;;  %v1025_v29 = vld [vmem:[#allocation3 + $0x24] ss:$8 sps:$4 sm:$0xff]   ;;  %v1026_v31 = vld [vmem:[#allocation3 + $0x50] ss:$8 sps:$4 sm:$0xff]  }
  0x2a   : > { %s237_s30 = scalar_lea.vmem %s1329_s0, %s949_s14  ;;  %v1023_v30 = vld [vmem:[#allocation3 + $0x20] ss:$8 sps:$4 sm:$0xff]   ;;  %v1028_v32 = vld [vmem:[#allocation3 + $0x54] ss:$8 sps:$4 sm:$0xff]   ;;  %v1029_v33 = vld [vmem:[#allocation3 + $0x10] ss:$8 sps:$4 sm:$0xff]  }
  0x2b   : > { %v239_v5 = vld [vmem:[%s237_s30] sm:$0xf]  ;;  %v240_v6 = vld [vmem:[%s237_s30 + $0x4] sm:$0xf]  ;;  %928 = vmatpush3.bf16.msra.mxu0 %v1007_v3  ;;  %936 = vmatpush3.bf16.msra.mxu1 %v1008_v4  ;;  %v1031_v34 = vld [vmem:[#allocation3 + $0x14] ss:$8 sps:$4 sm:$0xff]  }
  0x2c   : > { %v870_v7 = vcombine.low %v239_v5, %v240_v6  ;;  %v1010_v8 = vld [vmem:[%s237_s30 + $0x8] ss:$0 sps:$4 sm:$0x11]   ;;  %941 = vmatprep.subr.bf16.mxu0 %v1145_v0  ;;  %v383_v12 = vld [vmem:[%s237_s30] sm:$0xe]  ;;  %541 = vmatprep.subr.bf16.mxu1 %v1016_v23  ;;  %s230_s23 = sand.u32 1, %s1132_s19  }
  0x2d   : > { %v267_v11 = vshll.u32 %v1010_v8, 16  ;;  %v878_v17 = vcombine.low %v383_v12, %v240_v6  ;;  %v393_v21 = vrot.slane %v1010_v8, 1  ;;  %v1034_v35 = vld [vmem:[#allocation3 + $0x44] ss:$8 sps:$4 sm:$0xff]   ;;  %465 = vst.msk [vmem:[#allocation2] sm:$0x1] %vm464_vm4, %v1145_v0 }
  0x2e   : > { %v260_v9 = vshrl.u32 %v870_v7, 16  ;;  %v262_v10 = vshll.u32 %v870_v7, 16  ;;  %938 = vmatmul.mubr.msk.bf16.vlgmr.msra.gmra.mxu1 %vm283_vm1, %v870_v7  ;;  %v1037_v36 = vld [vmem:[#allocation3 + $0x4] ss:$8 sps:$4 sm:$0xff]   ;;  %v1032_v38 = vld [vmem:[#allocation3 + $0x40] ss:$8 sps:$4 sm:$0xff]  }
  0x2f   : > { %v269_v14 = vrot.slane %v267_v11, 1  ;;  %v392_v20 = vrot.slane %v878_v17, 1  ;;  %542 = vmatpush1.bf16.msra.mxu1 %v1014_v24  ;;  %565 = vmatprep.mubr.bf16.mxu1 %v1147_v37  ;;  %v1035_v39 = vld [vmem:[#allocation3] ss:$8 sps:$4 sm:$0xff]   ;;  %v1040_v40 = vld [vmem:[#allocation3 + $0xb4] ss:$8 sps:$4 sm:$0xff]  }
  0x30   : > { %v264_v13 = vrot.slane %v262_v10, 1  ;;  %543 = vmatprep.subr.bf16.mxu1 %v1022_v27  ;;  %v882_v51 = vld [vmem:[%s1331_s2] ss:$0 sm:$0xff]  ;;  %v1038_v62 = vld [vmem:[#allocation3 + $0xb0] ss:$8 sps:$4 sm:$0xff]   ;;  %s868_s25 = sshll.u32 %s230_s23, 3 }
  0x31   : > { %v394_v22 = vsel %vm391_vm3, %v392_v20, %v393_v21  ;;  %v1043_v3 = vld [vmem:[#allocation3 + $0xa4] ss:$8 sps:$4 sm:$0xff]   ;;  %v1041_v4 = vld [vmem:[#allocation3 + $0xa0] ss:$8 sps:$4 sm:$0xff]   ;;  %v1046_v5 = vld [vmem:[#allocation3 + $0x94] ss:$8 sps:$4 sm:$0xff]  }
  0x32   : > { %v265_v16 = vor.u32 %v264_v13, %v260_v9  ;;  %v1044_v6 = vld [vmem:[#allocation3 + $0x90] ss:$8 sps:$4 sm:$0xff]   ;;  %v1049_v7 = vld [vmem:[#allocation3 + $0x84] ss:$8 sps:$4 sm:$0xff]   ;;  %v1047_v8 = vld [vmem:[#allocation3 + $0x80] ss:$8 sps:$4 sm:$0xff]  }
  0x33   : > { %544 = vmatpush1.bf16.msra.mxu1 %v1020_v28  ;;  %s915_s26 = sshll.u32 %s1200_s22, 7  ;;  %s232_s30 = scalar_lea.vmem [#allocation6], %s868_s25 }
  0x34   : > { %v270_v18 = vsel %vm258_vm2, %v265_v16, %v269_v14  ;;  %545 = vmatprep.subr.bf16.mxu1 %v1028_v32  ;;  %s791_s6 = sshll.u32 %s232_s30, 4  ;;  %s789_s9 = scalar_lea.hbm %s1334_s5, %s915_s26  ;;  %s792_s6 = int_to_ptr.vmem [resolvable:$true] %s791_s6 }
  0x35   : > { %930 = vmatmul.mubr.msk.bf16.vlgmr.msra.gmra.mxu0 %vm283_vm1, %v270_v18  ;;  %s777_s10 = scalar_lea.sflag [#allocation5], %s230_s23  ;;  %s1076_s11 = scalar_lea.vmem %s792_s6, 128 }
  0x36   : > { %942 = vmatpush3.bf16.msra.mxu0 %v1011_v15  ;;  %945 = vmatprep.mubr.msk.bf16.mxu0 %vm1146_vm0, %v1145_v0  ;;  %v757_v15 = vlaneseq  ;;  %p1077_p6 = scmp.ne.s32.totalorder %s792_s6, %s1076_s11  ;;  %s1148_s12 = smov [#allocation6]  }
  0x37   : > { %943 = vmatprep.subr.bf16.mxu0 %v1145_v0  ;;  %546 = vmatpush1.bf16.msra.mxu1 %v1026_v31  ;;  %s1080_s13 = sshll.u32 %s1148_s12, 4  ;;  %s1081_s13 = int_to_ptr.vmem [resolvable:$false] %s1080_s13 }
  0x38   : > { %547 = vmatprep.subr.bf16.mxu1 %v1034_v35  ;;  %v758_v20 = vshrl.u32 %v757_v15, 7  ;;  %p1078_p9 = pnand %p1077_p6, %p1217_p5  ;;  %s1082_s22 = scalar_lea.vmem %s1081_s13, 256 }
  0x39   : > { %p1083_p11 = scmp.lt.s32.totalorder %s792_s6, %s1081_s13  ;;  %p1084_p12 = scmp.lt.s32.totalorder %s1082_s22, %s1076_s11 }
  0x3a   : > { %944 = vmatpush3.bf16.msra.mxu0 %v1012_v19  ;;  %v759_v21 = vsub.s32 0, %v758_v20  ;;  %v763_v23 = vsub.s32 1, %v758_v20  ;;  %p1079_p10 = pneg %p1078_p9 }
  0x3b   : > { %625 = vmatprep.subr.bf16.mxu0 %v1019_v25  ;;  %548 = vmatpush1.bf16.msra.mxu1 %v1032_v38  ;;  %p1085_p13 = por %p1084_p12, %p1083_p11 }
  0x3c   : > { %720 = vmatprep.subr.bf16.mxu1 %v1040_v40 }
  0x3d   : > { %946 = vmatmul.mubr.msk.bf16.vlgmr.msra.gmra.mxu0 %vm283_vm1, %v394_v22  ;;  %v755_v22 = vld [vmem:[%s1333_s4] sm:$0x3]  ;;  %p1086_p0 = pnand %p1085_p13, %p1079_p10 }
  0x3e   : > { %626 = vmatpush1.bf16.msra.mxu0 %v1017_v26  ;;  %649 = vmatprep.mubr.bf16.mxu0 %v1147_v37  ;;  %v760_v25 = vrot.slane %v755_v22, %v759_v21 }
  0x3f   : > { %627 = vmatprep.subr.bf16.mxu0 %v1025_v29  ;;  %v764_v29 = vrot.slane %v755_v22, %v763_v23 }
  0x42   : > { %628 = vmatpush1.bf16.msra.mxu0 %v1023_v30 }
  0x43   : > { %629 = vmatprep.subr.bf16.mxu0 %v1031_v34 }
  0x46   : > { %630 = vmatpush1.bf16.msra.mxu0 %v1029_v33 }
  0x47   : > { %631 = vmatprep.subr.bf16.mxu0 %v1037_v36 }
  0x4a   : > { %632 = vmatpush1.bf16.msra.mxu0 %v1035_v39 }
  0xee   : > { %v376_v41 = vpop.f32.mrf.mxu1 }
  0xf0   : > { %v939_v42 = vpop.f32.mrf.mxu1 }
  0xf2   : > { %v379_v44 = vpop.f32.mrf.mxu1 }
  0xf4   : > { %v940_v46 = vpop.f32.mrf.mxu1 }
  0xf5   : > { %v321_v43 = vpop.f32.mrf.mxu0 }
  0xf6   : > { %v377_v49 = vadd.f32 %v376_v41, %v321_v43 }
  0xf7   : > { %v931_v45 = vpop.f32.mrf.mxu0 }
  0xf9   : > { %v324_v47 = vpop.f32.mrf.mxu0 }
  0xfa   : > { %v380_v54 = vadd.f32 %v379_v44, %v324_v47 }
  0xfb   : > { %v932_v48 = vpop.f32.mrf.mxu0 }
  0xfd   : > { %v444_v50 = vpop.f32.mrf.mxu0 }
  0xfe   : > { %v451_v52 = vadd.f32 %v444_v50, %v377_v49 }
  0xff   : > { %v947_v53 = vpop.f32.mrf.mxu0 }
 0x100   : > { %v460_v55 = vadd.f32 %v882_v51, %v451_v52 }
 0x101   : > { %v447_v56 = vpop.f32.mrf.mxu0 }
 0x102   : > { %v462_v57 = vmax.f32 %v460_v55, 0.0  ;;  %v452_v58 = vadd.f32 %v447_v56, %v380_v54 }
 0x103   : > { %v948_v59 = vpop.f32.mrf.mxu0 }
 0x104   : > { %v461_v60 = vadd.f32 %v882_v51, %v452_v58  ;;  %467 = vst.msk [vmem:[#allocation2 + $0x1] sm:$0xff] %vm466_vm5, %v462_v57 }
 0x106   : > { %v463_v61 = vmax.f32 %v461_v60, 0.0 }
 0x108   : > { %468 = vst.msk [vmem:[#allocation2 + $0x9] sm:$0xff] %vm466_vm5, %v463_v61 }
 0x10f   : > { %v480_v63 = vld [vmem:[#allocation2 + $0x1] ss:$4 sm:$0xf]  ;;  %v469_v0 = vld [vmem:[#allocation2] ss:$4 sm:$0xf] }
 0x110   : > { %v489_v1 = vpack.c.bf16 %v480_v63, %v480_v63  ;;  %v478_v2 = vpack.c.bf16 %v469_v0, %v469_v0  ;;  %v659_v9 = vld [vmem:[#allocation2 + $0x2] ss:$4 sm:$0xf] }
 0x111   : > { %v668_v10 = vpack.c.bf16 %v659_v9, %v659_v9 }
 0x112   : > { %891 = vmatmul.mubr.msk.bf16.vlgmr.msra.gmra.mxu1 %vm466_vm5, %v489_v1  ;;  %900 = vmatmul.mubr.msk.bf16.vlgmr.msra.gmra.mxu0 %vm466_vm5, %v478_v2 }
 0x113   : > { %721 = vmatpush1.bf16.msra.mxu1 %v1038_v62  ;;  %744 = vmatprep.mubr.bf16.mxu1 %v1147_v37 }
 0x114   : > { %722 = vmatprep.subr.bf16.mxu1 %v1043_v3 }
 0x117   : > { %723 = vmatpush1.bf16.msra.mxu1 %v1041_v4 }
 0x118   : > { %724 = vmatprep.subr.bf16.mxu1 %v1046_v5 }
 0x11b   : > { %725 = vmatpush1.bf16.msra.mxu1 %v1044_v6 }
 0x11c   : > { %726 = vmatprep.subr.bf16.mxu1 %v1049_v7 }
 0x11f   : > { %727 = vmatpush1.bf16.msra.mxu1 %v1047_v8 }
 0x122   : > { %909 = vmatmul.mubr.msk.bf16.vlgmr.msra.gmra.mxu1 %vm466_vm5, %v668_v10 }
 0x1d2   : > { %v567_v11 = vpop.f32.mrf.mxu1  ;;  %v651_v12 = vpop.f32.mrf.mxu0 }
 0x1d3   : > { %v652_v24 = vadd.f32 %v651_v12, %v567_v11 }
 0x1d4   : > { %v569_v13 = vpop.f32.mrf.mxu1  ;;  %v653_v14 = vpop.f32.mrf.mxu0 }
 0x1d5   : > { %v654_v27 = vadd.f32 %v653_v14, %v569_v13 }
 0x1d6   : > { %v571_v16 = vpop.f32.mrf.mxu1  ;;  %v655_v17 = vpop.f32.mrf.mxu0 }
 0x1d8   : > { %v572_v18 = vpop.f32.mrf.mxu1  ;;  %v656_v19 = vpop.f32.mrf.mxu0 }
 0x1e2   : > { %v746_v26 = vpop.f32.mrf.mxu1 }
 0x1e3   : > { %v753_v28 = vadd.f32 %v746_v26, %v652_v24 }
 0x1e4   : > { %v748_v30 = vpop.f32.mrf.mxu1 }
 0x1e5   : > { %v767_v31 = vadd.f32 %v760_v25, %v753_v28  ;;  %v754_v32 = vadd.f32 %v748_v30, %v654_v27 }
 0x1e6   : > { %v750_v33 = vpop.f32.mrf.mxu1 }
 0x1e7   : > { %v768_v34 = vadd.f32 %v764_v29, %v754_v32  ;;  %v769_v36 = vmax.f32 %v767_v31, 0.0 }
 0x1e8   : > { %v751_v35 = vpop.f32.mrf.mxu1 }
 0x1e9   : > { %v770_v37 = vmax.f32 %v768_v34, 0.0 }
 0x1eb   : > { %v773_v38 = vcombine.low %v769_v36, %v770_v37 }
 0x1ed   : > { %775 = vst [vmem:[%s232_s30] sm:$0xff] %v773_v38 }
 0x1ee   : > { %1089 = shalt.err (!%p1086_p0)
}
 0x1ef   : > { %s1090_s14 = scalar_lea.hbm %s789_s9, 128  ;;  %s1094_s17 = scalar_lea.hbm %s1334_s5, 256 }
 0x1f0   : > { %p1091_p1 = scmp.ne.s32.totalorder %s789_s9, %s1090_s14  ;;  %p1095_p4 = scmp.lt.s32.totalorder %s789_s9, %s1334_s5 }
 0x1f1   : > { %p1096_p7 = scmp.lt.s32.totalorder %s1094_s17, %s1090_s14 }
 0x1f2   : > { %p1092_p2 = pnand %p1091_p1, %p1217_p5 }
 0x1f3   : > { %p1097_p8 = por %p1096_p7, %p1095_p4 }
 0x1f4   : > { %p1093_p3 = pneg %p1092_p2 }
 0x1f6   : > { %p1098_p6 = pnand %p1097_p8, %p1093_p3 }
 0x1f8   : > { %1101 = shalt.err (!%p1098_p6)
}
 0x1f9   : > { %954 = dma.vmem_to_hbm [thread:$0]  (%p1217_p5), %s792_s6, 128, %s789_s9, %s777_s10  }
 0x1fa PF: > { %p966_p9 = scmp.ge.s32.totalorder %s1140_s21, 2  ;;  %s803_s26 = sand.u32 1, %s1128_s18  }
 0x1fb   : > { %p1338_p10 = scmp.ne.s32.totalorder %s1336_s29, 0  ;;  %s804_s30 = scalar_lea.sflag [#allocation5], %s803_s26 }
 0x1fd   : > { %p961_p11 = pnand %p966_p9, %p1338_p10 }
 0x1ff   : > { %p962_p12 = pneg %p961_p11 }
 0x201   : > { %1123 = dma.done.wait (%p962_p12), %s804_s30, 128  }
 0x202   : > { %1125 = vsyncadd (%p962_p12), %s804_s30, 4294967168  ;;  %p16_p13 = scmp.ge.s32.totalorder %s1204_s24, 4   ;;  %s1339_s18 = smov %s1132_s19 }
 0x203   : > { %s1340_s19 = smov %s1136_s20  ;;  %s1341_s20 = smov %s1215_s27 }
 0x204   : > { %s1342_s21 = smov %s1204_s24  ;;  %18 = sbr.rel (!%p16_p13) target bundleno = 4 (0x4), region = 82 }
 0x209   :  { %809 = vsyncpa [#allocation4], 1 }
 0x20a   :  { %811 = vsyncpa [#allocation4 + $0x1], 1 }
 0x20b   :  { %812 = vsyncpa [#allocation5], 1 }
 0x20c   :  { %814 = vsyncpa [#allocation5 + $0x1], 1 }

</bundles_post_ra>
